<compile_context>
chip_gen: v7x
topology: tpu7x:2x2x1
jax: 0.10.0
libtpu: 0.0.40
codegen_flags: <defaults>
</compile_context>

<pallas_src>
from functools import partial

import jax
import jax.numpy as jnp
from jax.experimental import pallas as pl
from jax.experimental.pallas import tpu as pltpu


# ----- model dims (synthetic env: observation_space.shape = (8,), n_actions=4)
OBS_DIMS = 8
H1 = 64
H2 = 32
N_ACTIONS = 4
LAYER_DIMS = [(OBS_DIMS, H1), (H1, H2), (H2, N_ACTIONS)]
N_LAYERS = len(LAYER_DIMS)

PAD = 128               # lane-dense feature width for the hidden layers
ONES_LANE = PAD - 1     # activation lane holding the constant 1.0 (bias fold)
MAX_TILE_B = 512        # upper bound on batch rows per grid step
NEG_BIG = -1e30         # mask value for padded logit lanes


def _forager_kernel(x_ref, w_ref, out_ref):
    """One batch tile: 3 matmuls (bf16 operands, f32 acc) + f32 softmax."""
    x = x_ref[...]                                    # (tile_b, OBS_DIMS) bf16

    # ---- layer 1: explicit bias add (input is not ones-lane augmented) ----
    w1_full = w_ref[0]                                # (128, 128) bf16, VMEM-resident
    w1 = w1_full[:OBS_DIMS, :]                        # (OBS_DIMS, 128)
    b1 = w1_full[ONES_LANE:ONES_LANE + 1, :].astype(jnp.float32)   # (1, 128)
    h = jnp.dot(x, w1, preferred_element_type=jnp.float32) + b1
    h = jnp.maximum(h, 0.0)
    # b1 row carries 1.0 at lane 127 -> h[:, 127] == 1.0, enabling the
    # ones-lane bias fold for layers 2 and 3.

    # ---- layer 2 + relu (bias folded via ones lane) ----
    h = jnp.maximum(
        jnp.dot(h.astype(jnp.bfloat16), w_ref[1],
                preferred_element_type=jnp.float32), 0.0)

    # ---- output layer -> logits (only first N_ACTIONS lanes are real) ----
    logits = jnp.dot(h.astype(jnp.bfloat16), w_ref[2],
                     preferred_element_type=jnp.float32)

    # mask padded lanes so they don't corrupt the softmax normalization
    lane = jax.lax.broadcasted_iota(jnp.int32, logits.shape, 1)
    logits = jnp.where(lane < N_ACTIONS, logits, NEG_BIG)

    m = jnp.max(logits, axis=-1, keepdims=True)
    e = jnp.exp(logits - m)
    denom = jnp.sum(e, axis=-1, keepdims=True)
    probs = e / denom                                  # exact division (tiny)
    out_ref[...] = probs[:, :N_ACTIONS]                # narrow store


def _round_up(x, m):
    return ((x + m - 1) // m) * m


def _choose_tile(b):
    """Pick (tile_b, b_pad): small tiles for small batches, >=2 tiles for big."""
    b8 = max(8, _round_up(b, 8))
    if b8 <= 8:
        tile = 8
    else:
        # at least two grid tiles (v7x two-TensorCore sharding), multiple of 8
        tile = min(MAX_TILE_B, _round_up((b8 + 1) // 2, 8))
    b_pad = _round_up(b8, tile)
    return tile, b_pad


@partial(jax.jit, static_argnames=("tile_b",))
def _forager_pallas(xp, w_packed, *, tile_b):
    b_pad = xp.shape[0]
    n_tiles = b_pad // tile_b
    return pl.pallas_call(
        _forager_kernel,
        out_shape=jax.ShapeDtypeStruct((b_pad, N_ACTIONS), jnp.float32),
        grid=(n_tiles,),
        in_specs=[
            # last dim equals the full array dim -> legal sub-(8,128) block
            pl.BlockSpec((tile_b, OBS_DIMS), lambda i: (i, 0)),
            # constant index_map -> weights stay resident in VMEM across steps
            pl.BlockSpec((N_LAYERS, PAD, PAD), lambda i: (0, 0, 0)),
        ],
        out_specs=pl.BlockSpec((tile_b, N_ACTIONS), lambda i: (i, 0)),
        compiler_params=pltpu.CompilerParams(
            dimension_semantics=("parallel",)),
    )(xp, w_packed)


def forager_forward(x, w_packed):
    """x: (batch, OBS_DIMS) -> (batch, N_ACTIONS) action probabilities."""
    x = jnp.asarray(x, jnp.float32)
    b = x.shape[0]
    tile_b, b_pad = _choose_tile(b)
    if b_pad != b:
        xp = jnp.zeros((b_pad, OBS_DIMS), jnp.float32).at[:b].set(x)
    else:
        xp = x
    xp = xp.astype(jnp.bfloat16)                      # matmul operand dtype
    out = _forager_pallas(xp, w_packed, tile_b=tile_b)
    return out[:b]


def init_params(key):
    """Per-layer (W, b) mimicking PyTorch nn.Linear default init; W is (in, out)."""
    params = []
    for fan_in, fan_out in LAYER_DIMS:
        key, kw, kb = jax.random.split(key, 3)
        bound = 1.0 / (fan_in ** 0.5)
        w = jax.random.uniform(kw, (fan_in, fan_out), jnp.float32, -bound, bound)
        b = jax.random.uniform(kb, (fan_out,), jnp.float32, -bound, bound)
        params.append((w, b))
    return params


def pack_params(params):
    """One-time packing: pad each layer to (128,128), fold bias into row 127, bf16."""
    packed = []
    for (w, b), (fan_in, fan_out) in zip(params, LAYER_DIMS):
        assert fan_in < ONES_LANE and fan_out < ONES_LANE
        wp = jnp.zeros((PAD, PAD), jnp.float32)
        wp = wp.at[:fan_in, :fan_out].set(w)
        wp = wp.at[ONES_LANE, :fan_out].set(b)        # bias row (hit by ones lane)
        wp = wp.at[ONES_LANE, ONES_LANE].set(1.0)     # propagate the ones lane
        packed.append(wp)
    return jnp.stack(packed, axis=0).astype(jnp.bfloat16)   # (3, 128, 128) bf16


def _reference_forward(x, params):
    """Plain-JAX f32 reference matching the PyTorch module exactly."""
    h = x.astype(jnp.float32)
    (w1, b1), (w2, b2), (w3, b3) = params
    h = jax.nn.relu(h @ w1 + b1)
    h = jax.nn.relu(h @ w2 + b2)
    return jax.nn.softmax(h @ w3 + b3, axis=-1)


def _reference_forward_bf16ops(x, params):
    """Reference mirroring the kernel's dtype choices (bf16 operands, f32 acc)."""
    bf = jnp.bfloat16
    (w1, b1), (w2, b2), (w3, b3) = params
    h = x.astype(bf)
    h = jnp.maximum(
        jnp.dot(h, w1.astype(bf), preferred_element_type=jnp.float32)
        + b1.astype(bf).astype(jnp.float32), 0.0)
    h = jnp.maximum(
        jnp.dot(h.astype(bf), w2.astype(bf), preferred_element_type=jnp.float32)
        + b2.astype(bf).astype(jnp.float32), 0.0)
    logits = (jnp.dot(h.astype(bf), w3.astype(bf), preferred_element_type=jnp.float32)
              + b3.astype(bf).astype(jnp.float32))
    return jax.nn.softmax(logits, axis=-1)


def _check(batch, key, params, w_packed):
    x = jax.random.normal(key, (batch, OBS_DIMS), jnp.float32)
    out = jax.block_until_ready(forager_forward(x, w_packed))
    assert out.shape == (batch, N_ACTIONS)

    ref_f32 = _reference_forward(x, params)
    ref_bf16 = _reference_forward_bf16ops(x, params)

    # vs exact f32 PyTorch semantics (loose: bf16 matmul operands)
    assert jnp.allclose(out, ref_f32, atol=2e-2, rtol=2e-2), \
        float(jnp.max(jnp.abs(out - ref_f32)))
    # vs a reference using the same bf16-operand contract (tight)
    assert jnp.allclose(out, ref_bf16, atol=2e-3, rtol=2e-3), \
        float(jnp.max(jnp.abs(out - ref_bf16)))
    # exact division -> rows sum to 1 within f32 rounding
    assert jnp.allclose(jnp.sum(out, axis=-1), jnp.ones((batch,)), atol=1e-5)


if __name__ == "__main__":
    key = jax.random.PRNGKey(0)
    kx1, kx2, kp = jax.random.split(key, 3)

    params = init_params(kp)
    w_packed = pack_params(params)

    _check(batch=8, key=kx1, params=params, w_packed=w_packed)    # single tile
    _check(batch=20, key=kx2, params=params, w_packed=w_packed)   # 2 tiles + row pad

    print("KERNEL_OK")
</pallas_src>

<mosaic_0001>
module attributes {stable_mosaic.version = 11 : i64} {
  func.func @_forager_kernel(%arg0: i32, %arg1: memref<8x8xbf16, #tpu.memory_space<vmem>>, %arg2: memref<3x128x128xbf16, #tpu.memory_space<vmem>>, %arg3: memref<8x4xf32, #tpu.memory_space<vmem>>) attributes {dimension_semantics = [#tpu.dimension_semantics<parallel>], iteration_bounds = array<i64: 1>, scalar_prefetch = 0 : i64, scratch_operands = 0 : i64, tpu.core_type = #tpu.core_type<tc>, window_params = [{transform_indices = @transform_0, window_bounds = array<i64: 8, 8>}, {pipeline_mode = #tpu.pipeline_mode<synchronous>, transform_indices = @transform_1, window_bounds = array<i64: 3, 128, 128>}, {transform_indices = @transform_2, window_bounds = array<i64: 8, 4>}]} {
    %c0 = arith.constant 0 : index
    %c0_0 = arith.constant 0 : index
    %0 = vector.load %arg1[%c0, %c0_0] : memref<8x8xbf16, #tpu.memory_space<vmem>>, vector<8x8xbf16>
    %c0_1 = arith.constant 0 : index
    %c0_2 = arith.constant 0 : index
    %c0_3 = arith.constant 0 : index
    %1 = vector.load %arg2[%c0_1, %c0_2, %c0_3] : memref<3x128x128xbf16, #tpu.memory_space<vmem>>, vector<1x128x128xbf16>
    %2 = vector.shape_cast %1 : vector<1x128x128xbf16> to vector<128x128xbf16>
    %3 = vector.extract_strided_slice %2 {offsets = [0, 0], sizes = [8, 128], strides = [1, 1]} : vector<128x128xbf16> to vector<8x128xbf16>
    %4 = vector.extract_strided_slice %2 {offsets = [127, 0], sizes = [1, 128], strides = [1, 1]} : vector<128x128xbf16> to vector<1x128xbf16>
    %5 = arith.extf %4 : vector<1x128xbf16> to vector<1x128xf32>
    %cst = arith.constant dense<0.000000e+00> : vector<8x128xf32>
    %6 = tpu.matmul %0, %3, %cst {dimension_numbers = #tpu.dot_dimension_numbers<[1], [0], [0], [1], [0, 0, 1, 1], [], []>} : vector<8x8xbf16>, vector<8x128xbf16>, vector<8x128xf32> -> vector<8x128xf32>
    %7 = vector.broadcast %5 : vector<1x128xf32> to vector<8x128xf32>
    %8 = arith.addf %6, %7 : vector<8x128xf32>
    %cst_4 = arith.constant 0.000000e+00 : f32
    %9 = vector.broadcast %cst_4 : f32 to vector<8x128xf32>
    %10 = arith.maximumf %8, %9 : vector<8x128xf32>
    %11 = arith.truncf %10 : vector<8x128xf32> to vector<8x128xbf16>
    %c1 = arith.constant 1 : index
    %c0_5 = arith.constant 0 : index
    %c0_6 = arith.constant 0 : index
    %12 = vector.load %arg2[%c1, %c0_5, %c0_6] : memref<3x128x128xbf16, #tpu.memory_space<vmem>>, vector<1x128x128xbf16>
    %13 = vector.shape_cast %12 : vector<1x128x128xbf16> to vector<128x128xbf16>
    %cst_7 = arith.constant dense<0.000000e+00> : vector<8x128xf32>
    %14 = tpu.matmul %11, %13, %cst_7 {dimension_numbers = #tpu.dot_dimension_numbers<[1], [0], [0], [1], [0, 0, 1, 1], [], []>} : vector<8x128xbf16>, vector<128x128xbf16>, vector<8x128xf32> -> vector<8x128xf32>
    %cst_8 = arith.constant 0.000000e+00 : f32
    %15 = vector.broadcast %cst_8 : f32 to vector<8x128xf32>
    %16 = arith.maximumf %14, %15 : vector<8x128xf32>
    %17 = arith.truncf %16 : vector<8x128xf32> to vector<8x128xbf16>
    %c2 = arith.constant 2 : index
    %c0_9 = arith.constant 0 : index
    %c0_10 = arith.constant 0 : index
    %18 = vector.load %arg2[%c2, %c0_9, %c0_10] : memref<3x128x128xbf16, #tpu.memory_space<vmem>>, vector<1x128x128xbf16>
    %19 = vector.shape_cast %18 : vector<1x128x128xbf16> to vector<128x128xbf16>
    %cst_11 = arith.constant dense<0.000000e+00> : vector<8x128xf32>
    %20 = tpu.matmul %17, %19, %cst_11 {dimension_numbers = #tpu.dot_dimension_numbers<[1], [0], [0], [1], [0, 0, 1, 1], [], []>} : vector<8x128xbf16>, vector<128x128xbf16>, vector<8x128xf32> -> vector<8x128xf32>
    %21 = tpu.iota {dimensions = array<i32: 1>} : vector<8x128xi32>
    %c4_i32 = arith.constant 4 : i32
    %22 = vector.broadcast %c4_i32 : i32 to vector<8x128xi32>
    %23 = arith.cmpi slt, %21, %22 : vector<8x128xi32>
    %cst_12 = arith.constant -1.000000e+30 : f32
    %24 = vector.broadcast %cst_12 : f32 to vector<8x128xf32>
    %25 = arith.select %23, %20, %24 : vector<8x128xi1>, vector<8x128xf32>
    %cst_13 = arith.constant dense<0xFF800000> : vector<8xf32>
    %26 = vector.multi_reduction <maximumf>, %25, %cst_13 [1] : vector<8x128xf32> to vector<8xf32>
    %27 = vector.shape_cast %26 : vector<8xf32> to vector<8x1xf32>
    %28 = vector.broadcast %27 : vector<8x1xf32> to vector<8x128xf32>
    %29 = arith.subf %25, %28 : vector<8x128xf32>
    %30 = math.exp %29 : vector<8x128xf32>
    %cst_14 = arith.constant dense<0.000000e+00> : vector<8xf32>
    %31 = vector.multi_reduction <add>, %30, %cst_14 [1] : vector<8x128xf32> to vector<8xf32>
    %32 = vector.shape_cast %31 : vector<8xf32> to vector<8x1xf32>
    %33 = vector.broadcast %32 : vector<8x1xf32> to vector<8x128xf32>
    %34 = arith.divf %30, %33 : vector<8x128xf32>
    %35 = vector.extract_strided_slice %34 {offsets = [0, 0], sizes = [8, 4], strides = [1, 1]} : vector<8x128xf32> to vector<8x4xf32>
    %c0_15 = arith.constant 0 : index
    %c0_16 = arith.constant 0 : index
    %36 = vector.load %arg3[%c0_15, %c0_16] : memref<8x4xf32, #tpu.memory_space<vmem>>, vector<8x4xf32>
    tpu.vector_store %arg3[%c0_15, %c0_16], %35 {strides = array<i32>} : memref<8x4xf32, #tpu.memory_space<vmem>>, vector<8x4xf32>,
    return
  }
  func.func @transform_0(%arg0: i32) -> (i32, i32) {
    %c0_i32 = arith.constant 0 : i32
    %c0_i32_0 = arith.constant 0 : i32
    return %arg0, %c0_i32 : i32, i32
  }
  func.func @transform_1(%arg0: i32) -> (i32, i32, i32) {
    %c0_i32 = arith.constant 0 : i32
    %c0_i32_0 = arith.constant 0 : i32
    %c0_i32_1 = arith.constant 0 : i32
    %c0_i32_2 = arith.constant 0 : i32
    return %c0_i32, %c0_i32_0, %c0_i32_1 : i32, i32, i32
  }
  func.func @transform_2(%arg0: i32) -> (i32, i32) {
    %c0_i32 = arith.constant 0 : i32
    %c0_i32_0 = arith.constant 0 : i32
    return %arg0, %c0_i32 : i32, i32
  }
}

</mosaic_0001>

<bundles_post_ra>
// kernel: _forager_pallas.1
= control target key start
LH: loop header
LB: loop body
LE: loop exit
PB: predicated region body
PF: predicated region fallthrough
CT: control target
= control target key end

     0   :  { %7 = vsyncpa [#allocation3], 0  ;;  %s544_s0 = inlined_call_operand.hbm [shape: bf16[8,8], index: 0, kind: input, shape index: {}]   ;;  %s545_s1 = inlined_call_operand.hbm [shape: bf16[3,128,128], index: 1, kind: input, shape index: {}]   ;;  %s546_s2 = inlined_call_operand.vmem [shape: f32[8,4], index: 2, kind: output, shape index: {}]  }
   0x1   :  { %8 = vsyncpa [#allocation5], 0  ;;  %s486_s9 = smov [#allocation2]   ;;  %s487_s11 = smov [#allocation4]  }
   0x2   :  { %s15_s10 = sshll.u32 %s486_s9, 4  ;;  %s24_s12 = sshll.u32 %s487_s11, 4  ;;  %s16_s10 = int_to_ptr.vmem [resolvable:$true] %s15_s10  ;;  %s507_s12 = int_to_ptr.vmem [resolvable:$true] %s24_s12 }
   0x3   :  { %s438_s15 = scalar_lea.hbm %s544_s0, 64 }
   0x4   :  { %p439_p0 = scmp.ne.s32.totalorder %s544_s0, %s438_s15  ;;  %p442_p1 = scmp.lt.u32.totalorder %s438_s15, %s544_s0 }
   0x6   :  { %p444_p2 = pnand %p442_p1, %p439_p0 }
   0x8   :  { %447 = shalt.err (!%p444_p2)
}
   0x9   :  { %s448_s20 = scalar_lea.vmem %s16_s10, 64  ;;  %p453_p4 = scmp.lt.s32.totalorder %s16_s10, %s16_s10 }
   0xa   :  { %p449_p3 = scmp.ne.s32.totalorder %s16_s10, %s448_s20  ;;  %p454_p5 = scmp.lt.s32.totalorder %s448_s20, %s448_s20 }
   0xc   :  { %p455_p6 = por %p454_p5, %p453_p4 }
   0xe   :  { %p456_p7 = pnand %p455_p6, %p449_p3 }
  0x10   :  { %459 = shalt.err (!%p456_p7)
}
  0x11   :  { %18 = dma.hbm_to_vmem [thread:$0]  %s544_s0, 64, %s16_s10, [#allocation3]  }
  0x12   :  { %s460_s25 = scalar_lea.hbm %s545_s1, 3072 }
  0x13   :  { %p461_p8 = scmp.ne.s32.totalorder %s545_s1, %s460_s25  ;;  %p464_p9 = scmp.lt.u32.totalorder %s460_s25, %s545_s1 }
  0x15   :  { %p466_p10 = pnand %p464_p9, %p461_p8 }
  0x17   :  { %469 = shalt.err (!%p466_p10)
}
  0x18   :  { %s470_s30 = scalar_lea.vmem %s507_s12, 3072  ;;  %p475_p12 = scmp.lt.s32.totalorder %s507_s12, %s507_s12 }
  0x19   :  { %p471_p11 = scmp.ne.s32.totalorder %s507_s12, %s470_s30  ;;  %p476_p13 = scmp.lt.s32.totalorder %s470_s30, %s470_s30 }
  0x1b   :  { %p477_p0 = por %p476_p13, %p475_p12 }
  0x1d   :  { %p478_p1 = pnand %p477_p0, %p471_p11 }
  0x1f   :  { %481 = shalt.err (!%p478_p1)
}
  0x20   :  { %s488_s0 = smov 64   ;;  %s489_s3 = smov 4  }
  0x21   :  { %30 = dma.hbm_to_vmem [thread:$0]  %s545_s1, 3072, %s507_s12, [#allocation5], %s488_s0, %s488_s0, %s489_s3  }
  0x22   :  { %482 = dma.done.wait [#allocation3], 64  }
  0x23   :  { %483 = vsyncadd [#allocation3], 4294967232 }
  0x24   :  { %484 = dma.done.wait [#allocation5], 3072  }
  0x25   :  { %485 = vsyncadd [#allocation5], 4294964224  ;;  %v490_v0 = vmov 0.0   ;;  %vm491_vm0 = vmmov 0   ;;  %vm50_vm1 = vcmask 1043456   ;;  %vm46_vm2 = vcmask 64512  }
  0x26   :  { %366 = vmatprep.subr.bf16.mxu0 %v490_v0  ;;  %368 = vmatprep.mubr.msk.bf16.mxu0 %vm491_vm0, %v490_v0  ;;  %v39_v1 = vld [vmem:[#allocation4] sm:$0xf]  ;;  %v38_v4 = vld [vmem:[#allocation2] sm:$0xf]  ;;  %v419_v5 = vld [vmem:[#allocation4 + $0x48] sm:$0xff]   ;;  %v42_v19 = vlaneseq  ;;  %vm321_vm4 = vcmask 31744  }
  0x27   :  { %372 = vmatprep.subr.bf16.mxu1 %v490_v0  ;;  %388 = vmatprep.mubr.msk.bf16.mxu1 %vm491_vm0, %v490_v0  ;;  %v52_v2 = vsel %vm50_vm1, %v39_v1, 0  ;;  %v418_v3 = vld [vmem:[#allocation4 + $0x40] sm:$0xff]   ;;  %v420_v6 = vld [vmem:[#allocation4 + $0x50] sm:$0xff]   ;;  %v421_v7 = vld [vmem:[#allocation4 + $0x58] sm:$0xff]  }
  0x28   :  { %367 = vmatpush3.bf16.msra.mxu0 %v52_v2  ;;  %373 = vmatpush3.bf16.msra.mxu1 %v418_v3  ;;  %v422_v8 = vld [vmem:[#allocation4 + $0x60] sm:$0xff]   ;;  %v423_v9 = vld [vmem:[#allocation4 + $0x68] sm:$0xff]   ;;  %v424_v10 = vld [vmem:[#allocation4 + $0x70] sm:$0xff]   ;;  %v43_v20 = vshrl.u32 %v42_v19, 7  ;;  %v309_v39 = vand.u32 127, %v42_v19 }
  0x29   :  { %392 = vmatprep.subr.bf16.mxu0 %v490_v0  ;;  %374 = vmatprep.subr.bf16.mxu1 %v490_v0  ;;  %v425_v11 = vld [vmem:[#allocation4 + $0x78] sm:$0xff]   ;;  %v426_v12 = vld [vmem:[#allocation4 + $0x80] sm:$0xff]   ;;  %v427_v13 = vld [vmem:[#allocation4 + $0x88] sm:$0xff]  }
  0x2a   :  { %v428_v14 = vld [vmem:[#allocation4 + $0x90] sm:$0xff]   ;;  %v429_v15 = vld [vmem:[#allocation4 + $0x98] sm:$0xff]   ;;  %v430_v16 = vld [vmem:[#allocation4 + $0xa0] sm:$0xff]   ;;  %v44_v23 = vsub.s32 7, %v43_v20  ;;  %vm310_vm3 = vcmp.lt.s32.totalorder %v309_v39, 4 }
  0x2b   :  { %369 = vmatmul.mubr.msk.bf16.vlgmr.msra.gmra.mrb[0].mxu0 %vm46_vm2, %v38_v4  ;;  %v431_v17 = vld [vmem:[#allocation4 + $0xa8] sm:$0xff]   ;;  %v432_v18 = vld [vmem:[#allocation4 + $0xb0] sm:$0xff]   ;;  %v40_v21 = vld [vmem:[#allocation4 + $0x3c] sm:$0xf] }
  0x2c   :  { %408 = vmatprep.mubr.msk.bf16.mxu0 %vm491_vm0, %v490_v0  ;;  %375 = vmatpush3.bf16.msra.mxu1 %v419_v5  ;;  %v41_v22 = vunpack.c.l.bf16 %v40_v21  ;;  %v433_v32 = vld [vmem:[#allocation4 + $0xb8] sm:$0xff]  }
  0x2d   :  { %376 = vmatprep.subr.bf16.mxu1 %v490_v0  ;;  %393 = vmatpush3.bf16.msra.mxu0 %v426_v12 }
  0x2e   :  { %394 = vmatprep.subr.bf16.mxu0 %v490_v0  ;;  %v45_v24 = vrot.slane %v41_v22, %v44_v23 }
  0x30   :  { %377 = vmatpush3.bf16.msra.mxu1 %v420_v6 }
  0x31   :  { %378 = vmatprep.subr.bf16.mxu1 %v490_v0  ;;  %395 = vmatpush3.bf16.msra.mxu0 %v427_v13 }
  0x32   :  { %396 = vmatprep.subr.bf16.mxu0 %v490_v0 }
  0x34   :  { %379 = vmatpush3.bf16.msra.mxu1 %v421_v7 }
  0x35   :  { %380 = vmatprep.subr.bf16.mxu1 %v490_v0  ;;  %397 = vmatpush3.bf16.msra.mxu0 %v428_v14 }
  0x36   :  { %398 = vmatprep.subr.bf16.mxu0 %v490_v0 }
  0x38   :  { %381 = vmatpush3.bf16.msra.mxu1 %v422_v8 }
  0x39   :  { %382 = vmatprep.subr.bf16.mxu1 %v490_v0  ;;  %399 = vmatpush3.bf16.msra.mxu0 %v429_v15 }
  0x3a   :  { %400 = vmatprep.subr.bf16.mxu0 %v490_v0 }
  0x3c   :  { %383 = vmatpush3.bf16.msra.mxu1 %v423_v9 }
  0x3d   :  { %384 = vmatprep.subr.bf16.mxu1 %v490_v0  ;;  %401 = vmatpush3.bf16.msra.mxu0 %v430_v16 }
  0x3e   :  { %402 = vmatprep.subr.bf16.mxu0 %v490_v0 }
  0x40   :  { %385 = vmatpush3.bf16.msra.mxu1 %v424_v10 }
  0x41   :  { %386 = vmatprep.subr.bf16.mxu1 %v490_v0  ;;  %403 = vmatpush3.bf16.msra.mxu0 %v431_v17 }
  0x42   :  { %404 = vmatprep.subr.bf16.mxu0 %v490_v0 }
  0x44   :  { %387 = vmatpush3.bf16.msra.mxu1 %v425_v11 }
  0x45   :  { %405 = vmatpush3.bf16.msra.mxu0 %v432_v18 }
  0x46   :  { %406 = vmatprep.subr.bf16.mxu0 %v490_v0 }
  0x49   :  { %407 = vmatpush3.bf16.msra.mxu0 %v433_v32 }
  0xfe   :  { %v88_v25 = vpop.f32.mrb[0].mxu0 }
  0xff   :  { %v89_v26 = vadd.f32 %v88_v25, %v45_v24  ;;  %v370_v27 = vpop.f32.mrb[1].mxu0 }
 0x100   :  { %v91_v28 = vpop.f32.mrb[2].mxu0 }
 0x101   :  { %v94_v29 = vmax.f32 %v89_v26, 0.0  ;;  %v371_v30 = vpop.f32.mrb[3].mxu0 }
 0x103   :  { %v95_v31 = vpack.c.bf16 %v94_v29, %v94_v29 }
 0x105   :  { %389 = vmatmul.mubr.bf16.vlgmr.msra.gmra.mrb[0].mxu1 %v95_v31 }
 0x1d8   :  { %v195_v33 = vpop.f32.mrb[0].mxu1 }
 0x1d9   :  { %v201_v34 = vmax.f32 %v195_v33, 0.0  ;;  %v390_v35 = vpop.f32.mrb[1].mxu1 }
 0x1da   :  { %v198_v36 = vpop.f32.mrb[2].mxu1 }
 0x1db   :  { %v202_v37 = vpack.c.bf16 %v201_v34, %v201_v34  ;;  %v391_v38 = vpop.f32.mrb[3].mxu1 }
 0x1dd   :  { %409 = vmatmul.mubr.bf16.vlgmr.msra.gmra.mrb[4].mxu0 %v202_v37 }
 0x2b0   :  { %v302_v40 = vpop.f32.mrb[4].mxu0 }
 0x2b1   :  { %v410_v41 = vpop.f32.mrb[5].mxu0  ;;  %v311_v42 = vsel %vm310_vm3, %v302_v40, -1e+30 }
 0x2b2   :  { %312 = vmax.xlane.f32.xlu0 %v311_v42  ;;  %v305_v43 = vpop.f32.mrb[6].mxu0 }
 0x2b3   :  { %v411_v44 = vpop.f32.mrb[7].mxu0 }
 0x33f   :  { %v313_v45 = vpop.xlane.xlu0 %312 }
 0x340   :  { %v314_v46 = vsub.f32 %v311_v42, %v313_v45 }
 0x342   :  { %v315_v47 = vmul.f32 1.442695, %v314_v46 }
 0x344   :  { %434 = vpow2.f32 %v315_v47 }
 0x34e   :  { %v435_v48 = vpop.eup %434 }
 0x34f   :  { %317 = vadd.xlane.f32.xlu0 %v435_v48 }
 0x3dc   :  { %v318_v49 = vpop.xlane.xlu0 %317 }
 0x3dd   :  { %436 = vrcp.f32 %v318_v49 }
 0x3e7   :  { %v437_v50 = vpop.eup %436 }
 0x3e8   :  { %v320_v51 = vmul.f32 %v437_v50, %v435_v48 }
 0x3ea   :  { %322 = vst.msk [vmem:[%s546_s2] sm:$0xff] %vm321_vm4, %v320_v51 }
 0x3eb   :  { %327 = vsyncpa [#allocation3], 1 }
 0x3ec   :  { %328 = vsyncpa [#allocation5], 1 }

</bundles_post_ra>
